<compile_context>
chip_gen: v7x
topology: tpu7x:2x2x1
jax: 0.10.0
libtpu: 0.0.40
codegen_flags: <defaults>
</compile_context>

<pallas_src>
import functools
import math

import jax
import jax.numpy as jnp
from jax.experimental import pallas as pl
from jax.experimental.pallas import tpu as pltpu


def _glu_split_kernel(a_ref, g_ref, o_ref):
    """a_ref/g_ref: (tile_m, K) outputs/gate chunks; o_ref: (tile_m, K)."""
    a = a_ref[...].astype(jnp.float32)
    g = g_ref[...].astype(jnp.float32)
    o_ref[...] = (a * jax.nn.sigmoid(g)).astype(o_ref.dtype)


def _glu_fused_kernel(x_ref, o_ref, *, half):
    """x_ref: (tile_m, 2K) rows laid out as [outputs | gate]; o_ref: (tile_m, K)."""
    x = x_ref[...]
    a = x[:, :half].astype(jnp.float32)
    g = x[:, half:].astype(jnp.float32)
    o_ref[...] = (a * jax.nn.sigmoid(g)).astype(o_ref.dtype)


def _round_up(x, a):
    return ((x + a - 1) // a) * a


def _physical_vmem_bytes():
    """Best-effort physical VMEM query; conservative default covers v7x (64 MiB/TC)."""
    try:
        info = pltpu.get_tpu_info()
        v = getattr(info, "vmem_capacity_bytes", None)
        if v:
            return int(v)
    except Exception:
        pass
    return 64 << 20


def _choose_tile_m(m, k, itemsize, budget_bytes):
    """Largest sublane-aligned row tile whose double-buffered footprint fits the budget."""
    align = max(8, 32 // itemsize)            # 8 (f32) / 16 (bf16) / 32 (int8, fp8)
    bytes_per_row = 2 * 3 * k * itemsize      # 2 buffers x (2K in + K out) x itemsize
    cap_rows = max(1, budget_bytes // bytes_per_row)
    # Keep at least 2 grid steps when the row count allows it (v7x megacore sharding).
    if m >= 2 * align:
        cap_rows = min(cap_rows, _round_up((m + 1) // 2, align))
    if cap_rows >= m:
        return m
    tile = max(align, (cap_rows // align) * align)
    if tile >= m:
        return m                               # full dim: always a legal block shape
    # Prefer a divisor of m (no ragged last block) if it costs < 2x in tile size.
    if m % tile:
        t = tile
        while t >= max(align, tile // 2):
            if m % t == 0:
                return t
            t -= align
    return tile


def glu_pallas(x, dim):
    """Pallas GLU matching torch: outputs, gate = x.chunk(2, dim); outputs * sigmoid(gate)."""
    ndim = x.ndim
    dim = dim % ndim
    shape = x.shape
    two_c = shape[dim]
    if two_c % 2 != 0:
        raise ValueError(f"GLU split dim must be even, got {two_c}")
    half_c = two_c // 2
    outer = math.prod(shape[:dim])
    inner = math.prod(shape[dim + 1:])
    k = half_c * inner                         # per-row chunk width (lane axis)
    m = outer
    out_shape = shape[:dim] + (half_c,) + shape[dim + 1:]
    if m == 0 or k == 0:
        return jnp.zeros(out_shape, x.dtype)

    # Free (contiguous) view: each row is [outputs chunk (K) | gate chunk (K)].
    x2 = x.reshape(m, 2 * k)
    itemsize = x.dtype.itemsize

    # VMEM budget: ~3/8 of physical (24 MiB on v7x's 64 MiB, 48 MiB cap on 128 MiB parts).
    phys_vmem = _physical_vmem_bytes()
    resident_budget = min(phys_vmem * 3 // 8, 48 << 20)

    tile_m = _choose_tile_m(m, k, itemsize, resident_budget)
    grid = (pl.cdiv(m, tile_m),)

    footprint = 2 * tile_m * 3 * k * itemsize  # double-buffered resident bytes
    vmem_limit = int(max(footprint + (4 << 20), 32 << 20))

    params = pltpu.CompilerParams(
        dimension_semantics=("parallel",),
        vmem_limit_bytes=vmem_limit,
    )
    cost = pl.CostEstimate(
        flops=2 * m * k,
        transcendentals=m * k,
        bytes_accessed=3 * m * k * itemsize,
    )

    if k % 128 == 0:
        # Lane-aligned chunks: two BlockSpecs over the same array (block 0 = outputs,
        # block 1 = gate along the lane axis); both DMAs are lane-contiguous.
        out2 = pl.pallas_call(
            _glu_split_kernel,
            out_shape=jax.ShapeDtypeStruct((m, k), x.dtype),
            grid=grid,
            in_specs=[
                pl.BlockSpec((tile_m, k), lambda i: (i, 0)),
                pl.BlockSpec((tile_m, k), lambda i: (i, 1)),
            ],
            out_specs=pl.BlockSpec((tile_m, k), lambda i: (i, 0)),
            compiler_params=params,
            cost_estimate=cost,
        )(x2, x2)
    else:
        # K not a multiple of 128: keep the full 2K row per block (always lowerable)
        # and do the chunk split as a static in-kernel slice.
        out2 = pl.pallas_call(
            functools.partial(_glu_fused_kernel, half=k),
            out_shape=jax.ShapeDtypeStruct((m, k), x.dtype),
            grid=grid,
            in_specs=[pl.BlockSpec((tile_m, 2 * k), lambda i: (i, 0))],
            out_specs=pl.BlockSpec((tile_m, k), lambda i: (i, 0)),
            compiler_params=params,
            cost_estimate=cost,
        )(x2)

    return out2.reshape(out_shape)


def _reference_glu(x, dim):
    a, g = jnp.split(x, 2, axis=dim)
    return a * jax.nn.sigmoid(g)


if __name__ == "__main__":
    key = jax.random.PRNGKey(0)
    k1, k2, k3, k4 = jax.random.split(key, 4)

    # Case 1: GLU over the last (hidden) dim, e.g. a gated feed-forward. K = 128 (split path).
    x1 = jax.random.normal(k1, (2, 8, 256), jnp.float32)
    y1 = jax.block_until_ready(glu_pallas(x1, dim=-1))
    y1_ref = _reference_glu(x1, dim=-1)
    assert y1.shape == (2, 8, 128), y1.shape
    assert float(jnp.max(jnp.abs(y1 - y1_ref))) < 1e-5

    # Case 2: GLU over the channel dim (dim=1), as in the Conformer conv module. K = 1024.
    x2 = jax.random.normal(k2, (2, 16, 128), jnp.float32)
    y2 = jax.block_until_ready(glu_pallas(x2, dim=1))
    y2_ref = _reference_glu(x2, dim=1)
    assert y2.shape == (2, 8, 128), y2.shape
    assert float(jnp.max(jnp.abs(y2 - y2_ref))) < 1e-5

    # Case 3: K % 128 != 0 and ragged row tiling (fused full-row-block path).
    x3 = jax.random.normal(k3, (4, 10, 96), jnp.float32)
    y3 = jax.block_until_ready(glu_pallas(x3, dim=-1))
    y3_ref = _reference_glu(x3, dim=-1)
    assert y3.shape == (4, 10, 48), y3.shape
    assert float(jnp.max(jnp.abs(y3 - y3_ref))) < 1e-5

    # Case 4: bf16 input (gate math upcast to f32 in-kernel).
    x4 = jax.random.normal(k4, (2, 8, 256), jnp.float32).astype(jnp.bfloat16)
    y4 = jax.block_until_ready(glu_pallas(x4, dim=-1))
    y4_ref = _reference_glu(x4.astype(jnp.float32), dim=-1)
    assert y4.shape == (2, 8, 128), y4.shape
    assert float(jnp.max(jnp.abs(y4.astype(jnp.float32) - y4_ref))) < 2e-2

    print("KERNEL_OK")
</pallas_src>

<mosaic_0001>
module attributes {stable_mosaic.version = 11 : i64} {
  func.func @_glu_split_kernel(%arg0: i32, %arg1: memref<8x128xf32, #tpu.memory_space<vmem>>, %arg2: memref<8x128xf32, #tpu.memory_space<vmem>>, %arg3: memref<8x128xf32, #tpu.memory_space<vmem>>) attributes {dimension_semantics = [#tpu.dimension_semantics<parallel>], iteration_bounds = array<i64: 2>, scalar_prefetch = 0 : i64, scratch_operands = 0 : i64, tpu.core_type = #tpu.core_type<tc>, window_params = [{transform_indices = @transform_0, window_bounds = array<i64: 8, 128>}, {transform_indices = @transform_1, window_bounds = array<i64: 8, 128>}, {transform_indices = @transform_2, window_bounds = array<i64: 8, 128>}]} {
    %c0 = arith.constant 0 : index
    %c0_0 = arith.constant 0 : index
    %0 = vector.load %arg1[%c0, %c0_0] : memref<8x128xf32, #tpu.memory_space<vmem>>, vector<8x128xf32>
    %c0_1 = arith.constant 0 : index
    %c0_2 = arith.constant 0 : index
    %1 = vector.load %arg2[%c0_1, %c0_2] : memref<8x128xf32, #tpu.memory_space<vmem>>, vector<8x128xf32>
    %2 = arith.negf %1 : vector<8x128xf32>
    %3 = math.exp %2 : vector<8x128xf32>
    %cst = arith.constant 1.000000e+00 : f32
    %4 = vector.broadcast %cst : f32 to vector<8x128xf32>
    %5 = arith.addf %4, %3 : vector<8x128xf32>
    %6 = arith.divf %4, %5 : vector<8x128xf32>
    %7 = arith.mulf %0, %6 : vector<8x128xf32>
    %c0_3 = arith.constant 0 : index
    %c0_4 = arith.constant 0 : index
    %8 = vector.load %arg3[%c0_3, %c0_4] : memref<8x128xf32, #tpu.memory_space<vmem>>, vector<8x128xf32>
    tpu.vector_store %arg3[%c0_3, %c0_4], %7 {strides = array<i32>} : memref<8x128xf32, #tpu.memory_space<vmem>>, vector<8x128xf32>,
    return
  }
  func.func @transform_0(%arg0: i32) -> (i32, i32) {
    %c0_i32 = arith.constant 0 : i32
    %c0_i32_0 = arith.constant 0 : i32
    return %arg0, %c0_i32 : i32, i32
  }
  func.func @transform_1(%arg0: i32) -> (i32, i32) {
    %c1_i32 = arith.constant 1 : i32
    %c0_i32 = arith.constant 0 : i32
    return %arg0, %c1_i32 : i32, i32
  }
  func.func @transform_2(%arg0: i32) -> (i32, i32) {
    %c0_i32 = arith.constant 0 : i32
    %c0_i32_0 = arith.constant 0 : i32
    return %arg0, %c0_i32 : i32, i32
  }
}

</mosaic_0001>

<bundles_post_ra>
// kernel: tpu_custom_call.1
= control target key start
LH: loop header
LB: loop body
LE: loop exit
PB: predicated region body
PF: predicated region fallthrough
CT: control target
= control target key end

     0   :  { %7 = vsyncpa [#allocation3], 0  ;;  %s752_s0 = inlined_call_operand.hbm [shape: f32[16,256], index: 0, kind: input, shape index: {}]   ;;  %s753_s1 = inlined_call_operand.hbm [shape: f32[16,256], index: 1, kind: input, shape index: {}]   ;;  %s754_s2 = inlined_call_operand.hbm [shape: f32[16,128], index: 2, kind: output, shape index: {}]  }
   0x1   :  { %9 = vsyncpa [#allocation3 + $0x1], 0 }
   0x2   :  { %10 = vsyncpa [#allocation6], 0 }
   0x3   :  { %12 = vsyncpa [#allocation6 + $0x1], 0 }
   0x4   :  { %13 = vsyncpa [#allocation4], 0 }
   0x5   :  { %15 = vsyncpa [#allocation4 + $0x1], 0  ;;  %s544_s9 = smov 0   ;;  %s546_s10 = smov 0  }
   0x6   :  { %s548_s11 = smov 0   ;;  %s550_s12 = smov 0  }
   0x7 LB: > { %s565_s13 = sadd.s32 4294967295, %s524_s12   ;;  %s318_s14 = sadd.s32 4294967294, %s524_s12   ;;  %s524_s12 = sphi %s550_s12, %s773_s12   ;;  %s520_s11 = sphi %s548_s11, %s772_s11   ;;  %s516_s10 = sphi %s546_s10, %s771_s10   ;;  %s512_s9 = sphi %s544_s9, %s770_s9  }
   0x8   : > { %s569_s15 = sadd.s32 1, %s524_s12   ;;  %s28_s16 = sadd.s32 1, %s520_s11 }
   0x9   : > { %s25_s17 = ssub.s32 %s524_s12, %s569_s15  ;;  %p35_p0 = scmp.ne.s32.totalorder %s520_s11, %s516_s10 }
   0xa   : > { %p26_p1 = scmp.eq.s32.totalorder %s25_s17, 0  ;;  %p36_p2 = scmp.eq.s32.totalorder %s524_s12, 0 }
   0xb   : > { %p41_p3 = scmp.ne.s32.totalorder %s516_s10, %s512_s9  ;;  %p42_p4 = scmp.eq.s32.totalorder %s565_s13, 0 }
   0xc   : > { %s581_s18 = scalar_select %p26_p1, %s520_s11, %s28_s16  }
   0xd   : > { %p583_p5 = por %p36_p2, %p35_p0  ;;  %p587_p6 = por %p42_p4, %p41_p3 }
   0xe   : > { %p91_p7 = scmp.eq.s32.totalorder %s565_s13, 1  ;;  %p97_p8 = scmp.eq.s32.totalorder %s318_s14, 1 }
   0xf   : > { %s758_s20 = scalar_select %p587_p6, 1, 0 }
  0x10   : > { %p355_p10 = scmp.lt.s32.totalorder %s524_s12, 2  ;;  %p594_p11 = por %p91_p7, %p35_p0 }
  0x11   : > { %p598_p12 = por %p97_p8, %p41_p3  ;;  %s603_s23 = sand.u32 1, %s520_s11  }
  0x12   : > { %s759_s21 = scalar_select %p594_p11, 1, 0 }
  0x13   : > { %s760_s22 = scalar_select %p598_p12, 1, 0 }
  0x14   : > { %s336_s24 = sshll.u32 %s524_s12, 8  ;;  %s321_s25 = sshll.u32 %s603_s23, 3 }
  0x15   : > { %s612_s28 = scalar_lea.hbm %s752_s0, %s336_s24  ;;  %s121_s29 = scalar_lea.vmem [#allocation2], %s321_s25 }
  0x16   : > { %s129_s30 = sshll.u32 %s121_s29, 4  ;;  %p618_p13 = pnand %p355_p10, %p583_p5  ;;  %s622_s30 = int_to_ptr.vmem [resolvable:$true] %s129_s30 }
  0x17   : > { %s118_s4 = scalar_lea.sflag [#allocation3], %s603_s23  ;;  %s393_s5 = scalar_lea.hbm %s612_s28, 128 }
  0x18   : > { %p394_p2 = scmp.ne.s32.totalorder %s612_s28, %s393_s5  ;;  %p395_p3 = pneg %p618_p13 }
  0x19   : > { %s398_s8 = scalar_lea.hbm %s752_s0, 512  ;;  %p399_p5 = scmp.lt.u32.totalorder %s612_s28, %s752_s0 }
  0x1a   : > { %p396_p4 = pnand %p395_p3, %p394_p2  ;;  %p400_p8 = scmp.lt.u32.totalorder %s398_s8, %s393_s5 }
  0x1b   : > { %p402_p9 = scmp.lt.u32.totalorder %s393_s5, %s612_s28 }
  0x1c   : > { %p397_p7 = pneg %p396_p4  ;;  %p401_p10 = por %p400_p8, %p399_p5 }
  0x1e   : > { %p403_p0 = por %p402_p9, %p401_p10 }
  0x20   : > { %p404_p1 = pnand %p403_p0, %p397_p7 }
  0x22   : > { %407 = shalt.err (!%p404_p1)
}
  0x23   : > { %s408_s17 = scalar_lea.vmem %s622_s30, 128  ;;  %s526_s19 = smov [#allocation2]  }
  0x24   : > { %p409_p2 = scmp.ne.s32.totalorder %s622_s30, %s408_s17  ;;  %s413_s26 = sshll.u32 %s526_s19, 4  ;;  %s414_s26 = int_to_ptr.vmem [resolvable:$false] %s413_s26 }
  0x25   : > { %s415_s27 = scalar_lea.vmem %s414_s26, 256  ;;  %p416_p11 = scmp.lt.s32.totalorder %s622_s30, %s414_s26 }
  0x26   : > { %p411_p4 = pnand %p409_p2, %p395_p3  ;;  %p417_p5 = scmp.lt.s32.totalorder %s415_s27, %s408_s17 }
  0x28   : > { %p412_p12 = pneg %p411_p4  ;;  %p418_p8 = por %p417_p5, %p416_p11 }
  0x2a   : > { %p419_p9 = pnand %p418_p8, %p412_p12 }
  0x2c   : > { %422 = shalt.err (!%p419_p9)
}
  0x2d   : > { %347 = dma.hbm_to_vmem [thread:$0]  (!%p618_p13), %s612_s28, 128, %s622_s30, %s118_s4  }
  0x2e   : > { %p762_p0 = scmp.lt.s32.totalorder %s524_s12, 3  ;;  %p763_p1 = scmp.ge.s32.totalorder %s524_s12, 1 }
  0x2f   : > { %s260_s7 = scalar_lea.hbm %s753_s1, %s336_s24  ;;  %s140_s14 = scalar_lea.vmem [#allocation5], %s321_s25 }
  0x30   : > { %p656_p7 = pnand %p763_p1, %p762_p0  ;;  %s665_s8 = scalar_lea.hbm %s260_s7, 128 }
  0x31   : > { %s149_s16 = sshll.u32 %s140_s14, 4  ;;  %s137_s28 = scalar_lea.sflag [#allocation6], %s603_s23  ;;  %s150_s16 = int_to_ptr.vmem [resolvable:$true] %s149_s16 }
  0x32   : > { %s764_s29 = scalar_select %p656_p7, 1, 0 }
  0x33   : > { %s453_s30 = scalar_lea.hbm %s260_s7, 256  ;;  %s428_s24 = scalar_lea.hbm %s753_s1, 512 }
  0x34   : > { %p424_p11 = scmp.ne.s32.totalorder %s665_s8, %s453_s30  ;;  %p429_p2 = scmp.lt.u32.totalorder %s665_s8, %s753_s1 }
  0x35   : > { %p430_p4 = scmp.lt.u32.totalorder %s428_s24, %s453_s30  ;;  %p432_p8 = scmp.lt.u32.totalorder %s453_s30, %s665_s8 }
  0x36   : > { %p426_p12 = pnand %p424_p11, %p395_p3 }
  0x37   : > { %p431_p5 = por %p430_p4, %p429_p2 }
  0x38   : > { %p427_p10 = pneg %p426_p12 }
  0x39   : > { %p433_p9 = por %p432_p8, %p431_p5 }
  0x3b   : > { %p434_p0 = pnand %p433_p9, %p427_p10 }
  0x3d   : > { %437 = shalt.err (!%p434_p0)
}
  0x3e   : > { %s438_s23 = scalar_lea.vmem %s150_s16, 128  ;;  %s527_s25 = smov [#allocation5]  }
  0x3f   : > { %p439_p1 = scmp.ne.s32.totalorder %s150_s16, %s438_s23  ;;  %s443_s27 = sshll.u32 %s527_s25, 4  ;;  %s444_s27 = int_to_ptr.vmem [resolvable:$false] %s443_s27 }
  0x40   : > { %s445_s5 = scalar_lea.vmem %s444_s27, 256  ;;  %p446_p6 = scmp.lt.s32.totalorder %s150_s16, %s444_s27 }
  0x41   : > { %p441_p11 = pnand %p439_p1, %p395_p3  ;;  %p447_p7 = scmp.lt.s32.totalorder %s445_s5, %s438_s23 }
  0x43   : > { %p442_p12 = pneg %p441_p11  ;;  %p448_p2 = por %p447_p7, %p446_p6 }
  0x45   : > { %p449_p4 = pnand %p448_p2, %p442_p12 }
  0x47   : > { %452 = shalt.err (!%p449_p4)
}
  0x48   : > { %350 = dma.hbm_to_vmem [thread:$0]  (!%p618_p13), %s665_s8, 128, %s150_s16, %s137_s28  }
  0x49   : > { %p765_p10 = scmp.ne.s32.totalorder %s764_s29, 0 }
  0x4a   : > { %s691_s6 = sand.u32 (!%p765_p10), 1, %s516_s10   ;;  %p766_p3 = scmp.ne.s32.totalorder (!%p765_p10), %s758_s20, 0 }
  0x4b   : > { %158 = sbr.rel (%p765_p10) target bundleno = 128 (0x80), region = 28  ;;  %s328_s7 = sshll.u32 (!%p765_p10), %s691_s6, 3 }
  0x4c   : > { %s161_s14 = scalar_lea.sflag (!%p765_p10), [#allocation3], %s691_s6  ;;  %s164_s30 = scalar_lea.vmem (!%p765_p10), [#allocation2], %s328_s7 }
  0x52   : > { %499 = dma.done.wait (%p766_p3), %s161_s14, 128  }
  0x53   : > { %501 = vsyncadd (%p766_p3), %s161_s14, 4294967168  ;;  %s170_s3 = scalar_lea.sflag [#allocation6], %s691_s6  ;;  %s173_s8 = scalar_lea.vmem [#allocation5], %s328_s7 }
  0x54   : > { %503 = dma.done.wait (%p766_p3), %s170_s3, 128  }
  0x55   : > { %505 = vsyncadd (%p766_p3), %s170_s3, 4294967168  ;;  %v200_v0 = vld [vmem:[%s173_s8] sm:$0xff]  ;;  %v199_v4 = vld [vmem:[%s164_s30] sm:$0xff]  ;;  %s198_s29 = scalar_lea.vmem [#allocation7], %s328_s7  ;;  %s333_s28 = sshll.u32 %s565_s13, 7 }
  0x56   : > { %v331_v1 = vmul.f32 -1.442695, %v200_v0  ;;  %s223_s16 = sshll.u32 %s198_s29, 4  ;;  %s710_s17 = scalar_lea.hbm %s754_s2, %s333_s28  ;;  %s705_s16 = int_to_ptr.vmem [resolvable:$true] %s223_s16 }
  0x57   : > { %s210_s24 = scalar_lea.sflag [#allocation4], %s691_s6  ;;  %s454_s19 = scalar_lea.vmem %s705_s16, 128 }
  0x58   : > { %389 = vpow2.f32 %v331_v1  ;;  %p455_p6 = scmp.ne.s32.totalorder %s705_s16, %s454_s19  ;;  %p767_p13 = scmp.ne.s32.totalorder %s759_s21, 0 }
  0x59   : > { %s528_s13 = smov [#allocation7]  }
  0x5a   : > { %p456_p7 = pnand %p455_p6, %p767_p13  ;;  %s458_s26 = sshll.u32 %s528_s13, 4  ;;  %s459_s26 = int_to_ptr.vmem [resolvable:$false] %s458_s26 }
  0x5b   : > { %s460_s23 = scalar_lea.vmem %s459_s26, 256  ;;  %p461_p8 = scmp.lt.s32.totalorder %s705_s16, %s459_s26 }
  0x5c   : > { %p457_p5 = pneg %p456_p7  ;;  %p462_p9 = scmp.lt.s32.totalorder %s460_s23, %s454_s19 }
  0x5e   : > { %p463_p0 = por %p462_p9, %p461_p8 }
  0x60   : > { %p464_p1 = pnand %p463_p0, %p457_p5 }
  0x62   : > { %v390_v2 = vpop.eup %389 }
  0x63   : > { %v204_v3 = vadd.f32 1.0, %v390_v2 }
  0x65   : > { %391 = vrcp.f32 %v204_v3 }
  0x6f   : > { %v392_v5 = vpop.eup %391 }
  0x70   : > { %v207_v6 = vmul.f32 %v392_v5, %v199_v4 }
  0x72   : > { %208 = vst [vmem:[%s198_s29] sm:$0xff] %v207_v6 }
  0x73   : > { %467 = shalt.err (!%p464_p1)
}
  0x74   : > { %s468_s25 = scalar_lea.hbm %s710_s17, 128  ;;  %s472_s6 = scalar_lea.hbm %s754_s2, 256 }
  0x75   : > { %p469_p11 = scmp.ne.s32.totalorder %s710_s17, %s468_s25  ;;  %p473_p4 = scmp.lt.u32.totalorder %s710_s17, %s754_s2 }
  0x76   : > { %p474_p10 = scmp.lt.u32.totalorder %s472_s6, %s468_s25  ;;  %p476_p6 = scmp.lt.u32.totalorder %s468_s25, %s710_s17 }
  0x77   : > { %p470_p12 = pnand %p469_p11, %p767_p13 }
  0x78   : > { %p475_p3 = por %p474_p10, %p473_p4 }
  0x79   : > { %p471_p2 = pneg %p470_p12 }
  0x7a   : > { %p477_p7 = por %p476_p6, %p475_p3 }
  0x7c   : > { %p478_p5 = pnand %p477_p7, %p471_p2 }
  0x7e   : > { %481 = shalt.err (!%p478_p5)
}
  0x7f   : > { %342 = dma.vmem_to_hbm [thread:$0]  (%p767_p13), %s705_s16, 128, %s710_s17, %s210_s24  }
  0x80 PF: > { %s235_s30 = sand.u32 1, %s512_s9   ;;  %p768_p8 = scmp.ne.s32.totalorder %s760_s22, 0 }
  0x81   : > { %p769_p9 = scmp.ge.s32.totalorder %s524_s12, 2  ;;  %s236_s3 = scalar_lea.sflag [#allocation4], %s235_s30 }
  0x83   : > { %p352_p0 = pnand %p769_p9, %p768_p8 }
  0x85   : > { %507 = dma.done.wait (!%p352_p0), %s236_s3, 128  }
  0x86   : > { %509 = vsyncadd (!%p352_p0), %s236_s3, 4294967168  ;;  %p18_p1 = scmp.ge.s32.totalorder %s569_s15, 4   ;;  %s770_s9 = smov %s516_s10 }
  0x87   : > { %s771_s10 = smov %s520_s11  ;;  %s772_s11 = smov %s581_s18 }
  0x88   : > { %s773_s12 = smov %s569_s15  ;;  %20 = sbr.rel (!%p18_p1) target bundleno = 7 (0x7), region = 86 }
  0x8f   :  { %241 = vsyncpa [#allocation3], 1 }
  0x90   :  { %243 = vsyncpa [#allocation3 + $0x1], 1 }
  0x91   :  { %244 = vsyncpa [#allocation6], 1 }
  0x92   :  { %246 = vsyncpa [#allocation6 + $0x1], 1 }
  0x93   :  { %247 = vsyncpa [#allocation4], 1 }
  0x94   :  { %249 = vsyncpa [#allocation4 + $0x1], 1 }

</bundles_post_ra>
